<compile_context>
chip_gen: v5e
topology: v5e:2x2
jax: 0.10.0
libtpu: 0.0.40
codegen_flags: <defaults>
</compile_context>

<pallas_src>
import functools

import jax
import jax.numpy as jnp
from jax.experimental import pallas as pl
from jax.experimental.pallas import tpu as pltpu


# ---------------------------------------------------------------------------
# Kernel
# ---------------------------------------------------------------------------
def _triplet_kernel(a_ref, p_ref, n_ref, out_ref, acc_ref, *,
                    margin, total_b, first_masked_block, needs_mask):
    """One (block_b, D) tile of (anchor, positive, negative).

    Grid is (num_splits, blocks_per_split).  Each split accumulates per-sample
    hinge losses into a VMEM vector accumulator and emits its partial sum into
    its own lane-dense output tile on the last reduction step.
    """
    s = pl.program_id(0)          # split (one per TensorCore on 2-TC chips)
    j = pl.program_id(1)          # reduction step within the split
    nj = pl.num_programs(1)

    @pl.when(j == 0)
    def _():
        acc_ref[...] = jnp.zeros_like(acc_ref)

    a = a_ref[...].astype(jnp.float32)
    p = p_ref[...].astype(jnp.float32)
    n = n_ref[...].astype(jnp.float32)

    # Fused squared-distance difference, then ONE lane (XLU) reduction over D.
    dpos = a - p
    dneg = a - n
    d = dpos * dpos - dneg * dneg
    diff = jnp.sum(d, axis=1, keepdims=True)                  # (block_b, 1)
    # TODO(synk): on v7x (~3.2 TB/s HBM) move this reduce onto the idle MXU
    # (dot against a resident ones((D,128)) with an f32-accurate precision
    # setting, accumulating in the (block_b,128) matmul shape) — the XLU lane
    # reduce becomes co-critical there; on v5e/v6e it hides under the HBM
    # roofline, so the proven XLU path is kept here.

    # losses = relu(dp - dn + margin), per sample.
    losses = jnp.maximum(diff + jnp.float32(margin), 0.0)     # (block_b, 1)

    block_b = a_ref.shape[0]
    g = s * nj + j                                             # global block

    if needs_mask:
        # Only blocks at/after the first ragged block carry padded rows; the
        # mask ops are runtime-skipped everywhere else (pl.when), and the
        # whole branch is absent when the grid covers B exactly.
        if first_masked_block > 0:
            @pl.when(g < first_masked_block)
            def _():
                acc_ref[...] += losses

        @pl.when(g >= first_masked_block)
        def _():
            rows = g * block_b + jax.lax.broadcasted_iota(
                jnp.int32, losses.shape, 0)
            # Mask AFTER reduce/hinge: padded rows select a constant 0 even if
            # the out-of-bounds data produced NaN/Inf.
            acc_ref[...] += jnp.where(rows < total_b, losses, 0.0)
    else:
        acc_ref[...] += losses

    @pl.when(j == nj - 1)
    def _():
        partial = jnp.sum(acc_ref[...])
        out_ref[...] = jnp.full(out_ref.shape, partial, jnp.float32)


# ---------------------------------------------------------------------------
# Host-side helpers
# ---------------------------------------------------------------------------
def _tpu_hardware():
    """Best-effort (tensorcores_per_device, physical_vmem_bytes)."""
    kind = ""
    try:
        kind = jax.devices()[0].device_kind.lower()
    except Exception:
        pass

    vmem = None
    cores = None
    try:
        info = pltpu.get_tpu_info()
        v = getattr(info, "vmem_capacity_bytes", None)
        if isinstance(v, int) and v > 0:
            vmem = v
        for attr in ("num_tensorcores", "tensorcore_count", "num_cores",
                     "core_count"):
            c = getattr(info, attr, None)
            if isinstance(c, int) and c > 0:
                cores = c
                break
    except Exception:
        pass

    if cores is None:
        # v7x: 2 TensorCores / device; v4 & v5p: megacore (2 TCs); else 1.
        cores = 2 if any(t in kind for t in ("7x", "v7", "v4", "v5p")) else 1
    if vmem is None:
        vmem = (64 << 20) if any(t in kind for t in ("7x", "v7")) else (128 << 20)
    return cores, vmem


def _choose_block_b(B, D, itemsize, num_splits, *, input_budget_bytes,
                    pipeline_buffers=2, min_rows=512, align=16):
    """Smallest batch tile >= ~min_rows (bounds padding and TC imbalance),
    capped by the VMEM input budget and by B itself."""
    per_row = 3 * max(2, pipeline_buffers) * D * itemsize   # 3 streams x bufs
    vmem_rows = max(align, (input_budget_bytes // per_row) // align * align)

    rows_per_split = -(-B // num_splits)                    # ceil
    k = max(1, rows_per_split // min_rows)                  # blocks per split
    bb = -(-rows_per_split // k)                            # ceil
    bb = -(-bb // align) * align                            # round up to 16
    bb = min(bb, vmem_rows)
    if B >= align:
        bb = min(bb, (B // align) * align)                  # keep block <= B
    return max(align, bb)


def _block_spec(block_shape, index_map, pipeline_buffers):
    if pipeline_buffers != 2:
        # Sweepable deeper pipelining (review suggestion); default stays at the
        # standard, well-tested double buffering.
        try:
            return pl.BlockSpec(block_shape, index_map,
                                pipeline_mode=pl.Buffered(pipeline_buffers))
        except TypeError:
            pass
    return pl.BlockSpec(block_shape, index_map)


# ---------------------------------------------------------------------------
# Public wrapper
# ---------------------------------------------------------------------------
def triplet_loss(anchor, positive, negative, *, margin, size_average=True,
                 num_splits=None, block_rows=None, pipeline_buffers=2):
    """Pallas TripletLoss forward. anchor/positive/negative: (B, D)."""
    B, D = anchor.shape
    assert positive.shape == (B, D) and negative.shape == (B, D)
    itemsize = jnp.dtype(anchor.dtype).itemsize

    num_cores, vmem_phys = _tpu_hardware()
    if num_splits is None:
        num_splits = 2 if num_cores >= 2 else 1

    if vmem_phys <= (64 << 20):                 # v7x-class: 64 MiB per TC
        input_budget = 28 << 20
        vmem_limit_cap = 48 << 20
    else:                                       # v5e / v6e: 128 MiB physical
        input_budget = 56 << 20
        vmem_limit_cap = 96 << 20

    if block_rows is None:
        block_b = _choose_block_b(B, D, itemsize, num_splits,
                                  input_budget_bytes=input_budget,
                                  pipeline_buffers=pipeline_buffers)
    else:
        block_b = int(block_rows)

    total_blocks = -(-B // block_b)             # real (full or ragged) blocks
    if total_blocks < num_splits:
        num_splits = 1
    blocks_per_split = -(-total_blocks // num_splits)
    covered_blocks = num_splits * blocks_per_split
    covered_rows = covered_blocks * block_b

    needs_mask = covered_rows > B               # compile-time known
    first_masked_block = B // block_b           # first block with padded rows
    need_clamp = covered_blocks > total_blocks  # split rounding past the end
    last_block = total_blocks - 1

    def emb_index_map(s, j):
        g = s * blocks_per_split + j
        if need_clamp:
            # Positions past the last real block re-read it (no fully-OOB DMA);
            # the row mask zeroes their contribution.
            g = jnp.minimum(g, last_block)
        return (g, 0)

    emb_spec = _block_spec((block_b, D), emb_index_map, pipeline_buffers)
    out_spec = pl.BlockSpec((1, 8, 128), lambda s, j: (s, 0, 0))

    kernel = functools.partial(
        _triplet_kernel, margin=float(margin), total_b=B,
        first_masked_block=first_masked_block, needs_mask=needs_mask)

    # VMEM accounting: 3 inputs x pipeline buffers + (block_b,1) accumulator
    # (lane-padded) + per-split output tiles + headroom.
    in_bytes = 3 * max(2, pipeline_buffers) * block_b * D * itemsize
    acc_bytes = block_b * 128 * 4
    out_bytes = num_splits * 2 * 8 * 128 * 4
    vmem_limit = int(min(vmem_limit_cap,
                         max(32 << 20,
                             in_bytes + acc_bytes + out_bytes + (4 << 20))))

    partials = pl.pallas_call(
        kernel,
        out_shape=jax.ShapeDtypeStruct((num_splits, 8, 128), jnp.float32),
        grid_spec=pltpu.PrefetchScalarGridSpec(
            num_scalar_prefetch=0,
            grid=(num_splits, blocks_per_split),
            in_specs=[emb_spec, emb_spec, emb_spec],
            out_specs=out_spec,
            scratch_shapes=[pltpu.VMEM((block_b, 1), jnp.float32)],
        ),
        compiler_params=pltpu.CompilerParams(
            # "parallel" shards the split axis across TensorCores on 2-TC
            # parts (v7x / megacore); it simply runs serially on v5e/v6e.
            dimension_semantics=("parallel", "arbitrary"),
            vmem_limit_bytes=vmem_limit),
    )(anchor, positive, negative)

    total = jnp.sum(partials[:, 0, 0])
    if size_average:
        return total / jnp.float32(B)
    return total


# ---------------------------------------------------------------------------
# Self-test
# ---------------------------------------------------------------------------
if __name__ == "__main__":
    root = jax.random.PRNGKey(0)
    margin = 0.5

    def make_inputs(key, B, D, dtype):
        ka, kp, kn = jax.random.split(key, 3)
        a = jax.random.normal(ka, (B, D), dtype=jnp.float32).astype(dtype)
        p = jax.random.normal(kp, (B, D), dtype=jnp.float32).astype(dtype)
        n = jax.random.normal(kn, (B, D), dtype=jnp.float32).astype(dtype)
        return a, p, n

    def reference(a, p, n, size_average):
        a32, p32, n32 = (x.astype(jnp.float32) for x in (a, p, n))
        dp = jnp.sum((a32 - p32) ** 2, axis=1)
        dn = jnp.sum((a32 - n32) ** 2, axis=1)
        h = jnp.maximum(dp - dn + margin, 0.0)
        return jnp.mean(h) if size_average else jnp.sum(h)

    cases = [
        # (B, D, dtype, kwargs).  Case 1: unaligned B -> ragged block + mask.
        # Case 2: aligned B, bf16 inputs.  Case 3: forces the 2-split path
        # with a clamped trailing block so it is exercised on any chip.
        (20, 128, jnp.float32, {}),
        (64, 256, jnp.bfloat16, {}),
        (40, 128, jnp.float32, {"num_splits": 2, "block_rows": 16}),
    ]

    keys = jax.random.split(root, len(cases))
    for (B, D, dtype, kw), k in zip(cases, keys):
        a, p, n = make_inputs(k, B, D, dtype)
        for size_average in (True, False):
            got = jax.block_until_ready(
                triplet_loss(a, p, n, margin=margin,
                             size_average=size_average, **kw))
            want = reference(a, p, n, size_average)
            assert jnp.allclose(got, want, rtol=1e-4, atol=1e-3), \
                (B, D, str(dtype), size_average, float(got), float(want))

    print("KERNEL_OK")
</pallas_src>

<mosaic_0001>
module attributes {stable_mosaic.version = 11 : i64} {
  func.func @_triplet_kernel(%arg0: i32, %arg1: i32, %arg2: memref<16x128xf32, #tpu.memory_space<vmem>>, %arg3: memref<16x128xf32, #tpu.memory_space<vmem>>, %arg4: memref<16x128xf32, #tpu.memory_space<vmem>>, %arg5: memref<1x8x128xf32, #tpu.memory_space<vmem>>, %arg6: memref<16x1xf32, #tpu.memory_space<vmem>>) attributes {dimension_semantics = [#tpu.dimension_semantics<parallel>, #tpu.dimension_semantics<arbitrary>], iteration_bounds = array<i64: 1, 2>, scalar_prefetch = 0 : i64, scratch_operands = 1 : i64, tpu.core_type = #tpu.core_type<tc>, window_params = [{transform_indices = @transform_0, window_bounds = array<i64: 16, 128>}, {transform_indices = @transform_1, window_bounds = array<i64: 16, 128>}, {transform_indices = @transform_2, window_bounds = array<i64: 16, 128>}, {transform_indices = @transform_3, window_bounds = array<i64: 1, 8, 128>}]} {
    %c0_i32 = arith.constant 0 : i32
    %0 = arith.cmpi eq, %arg1, %c0_i32 : i32
    %1 = arith.extui %0 : i1 to i32
    %c0_i32_0 = arith.constant 0 : i32
    %2 = arith.cmpi ne, %1, %c0_i32_0 : i32
    scf.if %2 {
      %cst_13 = arith.constant 0.000000e+00 : f32
      %28 = vector.broadcast %cst_13 : f32 to vector<16x1xf32>
      %c0_14 = arith.constant 0 : index
      %c0_15 = arith.constant 0 : index
      %29 = vector.load %arg6[%c0_14, %c0_15] : memref<16x1xf32, #tpu.memory_space<vmem>>, vector<16x1xf32>
      tpu.vector_store %arg6[%c0_14, %c0_15], %28 {strides = array<i32>} : memref<16x1xf32, #tpu.memory_space<vmem>>, vector<16x1xf32>,
    } else {
    }
    %c0 = arith.constant 0 : index
    %c0_1 = arith.constant 0 : index
    %3 = vector.load %arg2[%c0, %c0_1] : memref<16x128xf32, #tpu.memory_space<vmem>>, vector<16x128xf32>
    %c0_2 = arith.constant 0 : index
    %c0_3 = arith.constant 0 : index
    %4 = vector.load %arg3[%c0_2, %c0_3] : memref<16x128xf32, #tpu.memory_space<vmem>>, vector<16x128xf32>
    %c0_4 = arith.constant 0 : index
    %c0_5 = arith.constant 0 : index
    %5 = vector.load %arg4[%c0_4, %c0_5] : memref<16x128xf32, #tpu.memory_space<vmem>>, vector<16x128xf32>
    %6 = arith.subf %3, %4 : vector<16x128xf32>
    %7 = arith.subf %3, %5 : vector<16x128xf32>
    %8 = arith.mulf %6, %6 : vector<16x128xf32>
    %9 = arith.mulf %7, %7 : vector<16x128xf32>
    %10 = arith.subf %8, %9 : vector<16x128xf32>
    %cst = arith.constant dense<0.000000e+00> : vector<16xf32>
    %11 = vector.multi_reduction <add>, %10, %cst [1] : vector<16x128xf32> to vector<16xf32>
    %12 = vector.shape_cast %11 : vector<16xf32> to vector<16x1xf32>
    %cst_6 = arith.constant 5.000000e-01 : f32
    %13 = vector.broadcast %cst_6 : f32 to vector<16x1xf32>
    %14 = arith.addf %12, %13 : vector<16x1xf32>
    %cst_7 = arith.constant 0.000000e+00 : f32
    %15 = vector.broadcast %cst_7 : f32 to vector<16x1xf32>
    %16 = arith.maximumf %14, %15 : vector<16x1xf32>
    %c2_i32 = arith.constant 2 : i32
    %17 = arith.muli %arg0, %c2_i32 : i32
    %18 = arith.addi %17, %arg1 : i32
    %c1_i32 = arith.constant 1 : i32
    %19 = arith.cmpi slt, %18, %c1_i32 : i32
    %20 = arith.extui %19 : i1 to i32
    %c0_i32_8 = arith.constant 0 : i32
    %21 = arith.cmpi ne, %20, %c0_i32_8 : i32
    scf.if %21 {
      %c0_13 = arith.constant 0 : index
      %c0_14 = arith.constant 0 : index
      %28 = vector.load %arg6[%c0_13, %c0_14] : memref<16x1xf32, #tpu.memory_space<vmem>>, vector<16x1xf32>
      %29 = arith.addf %28, %16 : vector<16x1xf32>
      %c0_15 = arith.constant 0 : index
      %c0_16 = arith.constant 0 : index
      %30 = vector.load %arg6[%c0_15, %c0_16] : memref<16x1xf32, #tpu.memory_space<vmem>>, vector<16x1xf32>
      tpu.vector_store %arg6[%c0_15, %c0_16], %29 {strides = array<i32>} : memref<16x1xf32, #tpu.memory_space<vmem>>, vector<16x1xf32>,
    } else {
    }
    %c1_i32_9 = arith.constant 1 : i32
    %22 = arith.cmpi sge, %18, %c1_i32_9 : i32
    %23 = arith.extui %22 : i1 to i32
    %c0_i32_10 = arith.constant 0 : i32
    %24 = arith.cmpi ne, %23, %c0_i32_10 : i32
    scf.if %24 {
      %c16_i32 = arith.constant 16 : i32
      %28 = arith.muli %18, %c16_i32 : i32
      %29 = tpu.iota {dimensions = array<i32: 0>} : vector<16x1xi32>
      %30 = vector.broadcast %28 : i32 to vector<16x1xi32>
      %31 = arith.addi %30, %29 : vector<16x1xi32>
      %c0_13 = arith.constant 0 : index
      %c0_14 = arith.constant 0 : index
      %32 = vector.load %arg6[%c0_13, %c0_14] : memref<16x1xf32, #tpu.memory_space<vmem>>, vector<16x1xf32>
      %c20_i32 = arith.constant 20 : i32
      %33 = vector.broadcast %c20_i32 : i32 to vector<16x1xi32>
      %34 = arith.cmpi slt, %31, %33 : vector<16x1xi32>
      %cst_15 = arith.constant 0.000000e+00 : f32
      %35 = vector.broadcast %cst_15 : f32 to vector<16x1xf32>
      %36 = arith.select %34, %16, %35 : vector<16x1xi1>, vector<16x1xf32>
      %37 = arith.addf %32, %36 : vector<16x1xf32>
      %c0_16 = arith.constant 0 : index
      %c0_17 = arith.constant 0 : index
      %38 = vector.load %arg6[%c0_16, %c0_17] : memref<16x1xf32, #tpu.memory_space<vmem>>, vector<16x1xf32>
      tpu.vector_store %arg6[%c0_16, %c0_17], %37 {strides = array<i32>} : memref<16x1xf32, #tpu.memory_space<vmem>>, vector<16x1xf32>,
    } else {
    }
    %c1_i32_11 = arith.constant 1 : i32
    %25 = arith.cmpi eq, %arg1, %c1_i32_11 : i32
    %26 = arith.extui %25 : i1 to i32
    %c0_i32_12 = arith.constant 0 : i32
    %27 = arith.cmpi ne, %26, %c0_i32_12 : i32
    scf.if %27 {
      %c0_13 = arith.constant 0 : index
      %c0_14 = arith.constant 0 : index
      %28 = vector.load %arg6[%c0_13, %c0_14] : memref<16x1xf32, #tpu.memory_space<vmem>>, vector<16x1xf32>
      %29 = vector.shape_cast %28 : vector<16x1xf32> to vector<1x16x1xf32>
      %cst_15 = arith.constant dense<0.000000e+00> : vector<1xf32>
      %30 = vector.multi_reduction <add>, %29, %cst_15 [1, 2] : vector<1x16x1xf32> to vector<1xf32>
      %31 = vector.shape_cast %30 : vector<1xf32> to vector<1x1x1xf32>
      %32 = vector.extract %31[0, 0, 0] : f32 from vector<1x1x1xf32>
      %33 = vector.broadcast %32 : f32 to vector<1x8x128xf32>
      %c0_16 = arith.constant 0 : index
      %c0_17 = arith.constant 0 : index
      %c0_18 = arith.constant 0 : index
      %34 = vector.load %arg5[%c0_16, %c0_17, %c0_18] : memref<1x8x128xf32, #tpu.memory_space<vmem>>, vector<1x8x128xf32>
      tpu.vector_store %arg5[%c0_16, %c0_17, %c0_18], %33 {strides = array<i32>} : memref<1x8x128xf32, #tpu.memory_space<vmem>>, vector<1x8x128xf32>,
    } else {
    }
    return
  }
  func.func @transform_0(%arg0: i32, %arg1: i32) -> (i32, i32) {
    %c2_i32 = arith.constant 2 : i32
    %0 = arith.muli %arg0, %c2_i32 : i32
    %1 = arith.addi %0, %arg1 : i32
    %c0_i32 = arith.constant 0 : i32
    %c0_i32_0 = arith.constant 0 : i32
    return %1, %c0_i32 : i32, i32
  }
  func.func @transform_1(%arg0: i32, %arg1: i32) -> (i32, i32) {
    %c2_i32 = arith.constant 2 : i32
    %0 = arith.muli %arg0, %c2_i32 : i32
    %1 = arith.addi %0, %arg1 : i32
    %c0_i32 = arith.constant 0 : i32
    %c0_i32_0 = arith.constant 0 : i32
    return %1, %c0_i32 : i32, i32
  }
  func.func @transform_2(%arg0: i32, %arg1: i32) -> (i32, i32) {
    %c2_i32 = arith.constant 2 : i32
    %0 = arith.muli %arg0, %c2_i32 : i32
    %1 = arith.addi %0, %arg1 : i32
    %c0_i32 = arith.constant 0 : i32
    %c0_i32_0 = arith.constant 0 : i32
    return %1, %c0_i32 : i32, i32
  }
  func.func @transform_3(%arg0: i32, %arg1: i32) -> (i32, i32, i32) {
    %c0_i32 = arith.constant 0 : i32
    %c0_i32_0 = arith.constant 0 : i32
    %c0_i32_1 = arith.constant 0 : i32
    return %arg0, %c0_i32, %c0_i32_0 : i32, i32, i32
  }
}

</mosaic_0001>

<bundles_post_ra>
// kernel: tpu_custom_call.1
= control target key start
LH: loop header
LB: loop body
LE: loop exit
PB: predicated region body
PF: predicated region fallthrough
CT: control target
= control target key end

     0   :  { %8 = vsyncpa [#allocation4], 0  ;;  %s1115_s0 = inlined_call_operand.hbm [shape: f32[20,128], index: 0, kind: input, shape index: {}]   ;;  %s1116_s1 = inlined_call_operand.hbm [shape: f32[20,128], index: 1, kind: input, shape index: {}]   ;;  %s1117_s2 = inlined_call_operand.hbm [shape: f32[20,128], index: 2, kind: input, shape index: {}]   ;;  %s1118_s3 = inlined_call_operand.hbm [shape: f32[1,8,128], index: 3, kind: output, shape index: {}]  }
   0x1   :  { %10 = vsyncpa [#allocation4 + $0x1], 0 }
   0x2   :  { %11 = vsyncpa [#allocation7], 0 }
   0x3   :  { %13 = vsyncpa [#allocation7 + $0x1], 0 }
   0x4   :  { %14 = vsyncpa [#allocation5], 0  ;;  %s888_s12 = smov 0   ;;  %s890_s13 = smov 0  }
   0x5   :  { %s892_s14 = smov 0   ;;  %s894_s15 = smov 0  }
   0x6   :  { %s896_s16 = smov 0   ;;  %s898_s17 = smov 0  }
   0x7 LB: > { %s917_s18 = sadd.s32 4294967295, %s855_s17   ;;  %s29_s19 = sadd.s32 1, %s851_s16  ;;  %s855_s17 = sphi %s898_s17, %s20_s17   ;;  %s851_s16 = sphi %s896_s16, %s1128_s16   ;;  %s847_s15 = sphi %s894_s15, %s1127_s15   ;;  %s843_s14 = sphi %s892_s14, %s1126_s14   ;;  %s839_s13 = sphi %s890_s13, %s1125_s13   ;;  %s835_s12 = sphi %s888_s12, %s1124_s12  }
   0x8   : > { %p30_p0 = scmp.ge.s32.totalorder %s29_s19, 2  ;;  %s43_s20 = sadd.s32 1, %s843_s14 }
   0x9   : > { %p50_p1 = scmp.ne.s32.totalorder %s843_s14, %s839_s13  ;;  %p51_p2 = scmp.eq.s32.totalorder %s855_s17, 0 }
   0xa   : > { %s1130_s19 = smov (%p30_p0, %s29_s19), 0  ;;  %p56_p4 = scmp.ne.s32.totalorder %s839_s13, %s835_s12 }
   0xb   : > { %p926_p3 = por %p51_p2, %p50_p1  ;;  %s40_s22 = ssub.s32 %s851_s16, %s1130_s19 }
   0xc   : > { %p57_p5 = scmp.eq.s32.totalorder %s917_s18, 0  ;;  %p41_p6 = scmp.eq.s32.totalorder %s40_s22, 0 }
   0xd   : > { %p547_p8 = scmp.ge.s32.totalorder %s855_s17, 2 }
   0xe   : > { %p934_p7 = por %p57_p5, %p56_p4 }
   0xf   : > { %s939_s24 = scalar_select %p41_p6, %s843_s14, %s43_s20  }
  0x10   : > { %162 = sbr.rel (%p547_p8) target bundleno = 129 (0x81), region = 16 }
  0x15   : > { %165 = sbr.rel (!%p926_p3) target bundleno = 57 (0x39), region = 20  ;;  %s166_s25 = sand.u32 (%p926_p3), 1, %s843_s14  }
  0x16   : > { %s549_s26 = sshll.u32 (%p926_p3), %s851_s16, 1  ;;  %s548_s27 = sshll.u32 (%p926_p3), %s166_s25, 4 }
  0x17   : > { %s174_s28 = ssub.s32 (%p926_p3), 3, %s549_s26  ;;  %s949_s5 = scalar_lea.sflag (%p926_p3), [#allocation4], %s166_s25 }
  0x18   : > { %p175_p9 = scmp.lt.s32.totalorder (%p926_p3), %s174_s28, 2  ;;  %s170_s6 = scalar_lea.vmem (%p926_p3), [#allocation3], %s548_s27 }
  0x1a   : > { %s1132_s28 = smov (!%p175_p9, %s174_s28), 2 }
  0x1b   : > { %s550_s29 = sshll.u32 %s1132_s28, 3 }
  0x1c   : > { %s178_s30 = ssub.s32 16, %s550_s29 }
  0x1d   : > { %s179_s4 = sshll.u32 %s178_s30, 4 }
  0x1e   : > { %180 = vsyncadd %s949_s5, %s179_s4  ;;  %p952_p10 = scmp.ne.s32.totalorder %s550_s29, 0  ;;  %s582_s8 = sshll.u32 %s851_s16, 4 }
  0x1f   : > { %s183_s11 = scalar_lea.hbm %s1115_s0, %s582_s8  ;;  %s960_s12 = sshll.u32 %s170_s6, 4  ;;  %s188_s12 = int_to_ptr.vmem [resolvable:$true] %s960_s12 }
  0x20   : > { %s185_s20 = sshll.u32 %s183_s11, 4  ;;  %s554_s22 = sshll.u32 %s1132_s28, 7  ;;  %s963_s20 = int_to_ptr.hbm [resolvable:$true] %s185_s20 }
  0x21   : > { %s652_s25 = sshra.s32 %s963_s20, 4  ;;  %s654_s26 = sshrl.u32 %s554_s22, 4  ;;  %s653_s25 = int_to_ptr.hbm [resolvable:$true] %s652_s25 }
  0x22   : > { %s659_s27 = scalar_lea.hbm %s653_s25, %s654_s26  ;;  %s663_s4 = scalar_lea.hbm %s1115_s0, 24 }
  0x23   : > { %p660_p11 = scmp.ne.s32.totalorder %s653_s25, %s659_s27  ;;  %p665_p0 = scmp.lt.s32.totalorder %s663_s4, %s659_s27 }
  0x25   : > { %p661_p12 = pnand %p660_p11, %p952_p10 }
  0x27   : > { %p662_p13 = pneg %p661_p12 }
  0x29   : > { %p667_p1 = pnand %p665_p0, %p662_p13 }
  0x2b   : > { %670 = shalt.err (!%p667_p1)
}
  0x2c   : > { %s671_s6 = sshra.s32 %s188_s12, 4  ;;  %s857_s9 = smov [#allocation3]   ;;  %s672_s6 = int_to_ptr.vmem [resolvable:$true] %s671_s6 }
  0x2d   : > { %s678_s8 = scalar_lea.vmem %s672_s6, %s654_s26  ;;  %s682_s10 = scalar_lea.vmem %s857_s9, 32 }
  0x2e   : > { %p679_p2 = scmp.ne.s32.totalorder %s672_s6, %s678_s8  ;;  %p684_p6 = scmp.lt.s32.totalorder %s682_s10, %s678_s8 }
  0x30   : > { %p680_p4 = pnand %p679_p2, %p952_p10 }
  0x32   : > { %p681_p5 = pneg %p680_p4 }
  0x34   : > { %p686_p8 = pnand %p684_p6, %p681_p5 }
  0x36   : > { %689 = shalt.err (!%p686_p8)
}
  0x37   : > { %s858_s11 = smov 128   ;;  %s859_s25 = smov 8  }
  0x38   : > { %193 = dma.hbm_to_vmem [thread:$0]  (%p952_p10), %s963_s20, %s554_s22, %s188_s12, %s949_s5, %s858_s11, %s858_s11, %s859_s25  }
  0x39 PF: > { %196 = sbr.rel (!%p926_p3) target bundleno = 93 (0x5d), region = 24  ;;  %s197_s26 = sand.u32 (%p926_p3), 1, %s855_s17  }
  0x3a   : > { %s199_s27 = sand.u32 (%p926_p3), 1, %s843_s14   ;;  %s556_s30 = sshll.u32 (%p926_p3), %s851_s16, 1 }
  0x3b   : > { %s555_s29 = sshll.u32 (%p926_p3), %s199_s27, 4  ;;  %s205_s4 = ssub.s32 (%p926_p3), 3, %s556_s30 }
  0x3c   : > { %p206_p9 = scmp.lt.s32.totalorder (%p926_p3), %s205_s4, 2  ;;  %s994_s5 = scalar_lea.sflag (%p926_p3), [#allocation7], %s197_s26 }
  0x3d   : > { %s201_s12 = scalar_lea.vmem (%p926_p3), [#allocation6], %s555_s29 }
  0x3e   : > { %s1134_s4 = smov (!%p206_p9, %s205_s4), 2 }
  0x3f   : > { %s557_s7 = sshll.u32 %s1134_s4, 3 }
  0x40   : > { %s209_s6 = ssub.s32 16, %s557_s7 }
  0x41   : > { %s210_s28 = sshll.u32 %s209_s6, 4 }
  0x42   : > { %211 = vsyncadd %s994_s5, %s210_s28  ;;  %p997_p10 = scmp.ne.s32.totalorder %s557_s7, 0  ;;  %s583_s22 = sshll.u32 %s851_s16, 4 }
  0x43   : > { %s214_s10 = scalar_lea.hbm %s1116_s1, %s583_s22  ;;  %s1005_s11 = sshll.u32 %s201_s12, 4  ;;  %s219_s11 = int_to_ptr.vmem [resolvable:$true] %s1005_s11 }
  0x44   : > { %s216_s25 = sshll.u32 %s214_s10, 4  ;;  %s561_s26 = sshll.u32 %s1134_s4, 7  ;;  %s1008_s25 = int_to_ptr.hbm [resolvable:$true] %s216_s25 }
  0x45   : > { %s691_s27 = sshra.s32 %s1008_s25, 4  ;;  %s693_s29 = sshrl.u32 %s561_s26, 4  ;;  %s692_s27 = int_to_ptr.hbm [resolvable:$true] %s691_s27 }
  0x46   : > { %s698_s30 = scalar_lea.hbm %s692_s27, %s693_s29  ;;  %s702_s28 = scalar_lea.hbm %s1116_s1, 24 }
  0x47   : > { %p699_p11 = scmp.ne.s32.totalorder %s692_s27, %s698_s30  ;;  %p704_p0 = scmp.lt.s32.totalorder %s702_s28, %s698_s30 }
  0x49   : > { %p700_p12 = pnand %p699_p11, %p997_p10 }
  0x4b   : > { %p701_p13 = pneg %p700_p12 }
  0x4d   : > { %p706_p1 = pnand %p704_p0, %p701_p13 }
  0x4f   : > { %709 = shalt.err (!%p706_p1)
}
  0x50   : > { %s710_s12 = sshra.s32 %s219_s11, 4  ;;  %s860_s8 = smov [#allocation6]   ;;  %s711_s12 = int_to_ptr.vmem [resolvable:$true] %s710_s12 }
  0x51   : > { %s717_s22 = scalar_lea.vmem %s711_s12, %s693_s29  ;;  %s721_s9 = scalar_lea.vmem %s860_s8, 32 }
  0x52   : > { %p718_p2 = scmp.ne.s32.totalorder %s711_s12, %s717_s22  ;;  %p723_p6 = scmp.lt.s32.totalorder %s721_s9, %s717_s22 }
  0x54   : > { %p719_p4 = pnand %p718_p2, %p997_p10 }
  0x56   : > { %p720_p5 = pneg %p719_p4 }
  0x58   : > { %p725_p8 = pnand %p723_p6, %p720_p5 }
  0x5a   : > { %728 = shalt.err (!%p725_p8)
}
  0x5b   : > { %s861_s10 = smov 128   ;;  %s862_s27 = smov 8  }
  0x5c   : > { %224 = dma.hbm_to_vmem [thread:$0]  (%p997_p10), %s1008_s25, %s561_s26, %s219_s11, %s994_s5, %s861_s10, %s861_s10, %s862_s27  }
  0x5d PF: > { %227 = sbr.rel (!%p926_p3) target bundleno = 129 (0x81), region = 28  ;;  %s228_s29 = sand.u32 (%p926_p3), 1, %s855_s17  }
  0x5e   : > { %s230_s30 = sand.u32 (%p926_p3), 1, %s843_s14   ;;  %s563_s6 = sshll.u32 (%p926_p3), %s851_s16, 1 }
  0x5f   : > { %s562_s7 = sshll.u32 (%p926_p3), %s230_s30, 4  ;;  %s236_s28 = ssub.s32 (%p926_p3), 3, %s563_s6 }
  0x60   : > { %p237_p9 = scmp.lt.s32.totalorder (%p926_p3), %s236_s28, 2  ;;  %s1039_s5 = scalar_lea.sflag (%p926_p3), [#allocation7], %s228_s29 }
  0x61   : > { %s232_s21 = scalar_lea.vmem (%p926_p3), [#allocation8], %s562_s7 }
  0x62   : > { %s1136_s28 = smov (!%p237_p9, %s236_s28), 2 }
  0x63   : > { %s564_s20 = sshll.u32 %s1136_s28, 3 }
  0x64   : > { %s240_s12 = ssub.s32 16, %s564_s20 }
  0x65   : > { %s241_s4 = sshll.u32 %s240_s12, 4 }
  0x66   : > { %242 = vsyncadd %s1039_s5, %s241_s4  ;;  %p1042_p3 = scmp.ne.s32.totalorder %s564_s20, 0  ;;  %s584_s25 = sshll.u32 %s851_s16, 4 }
  0x67   : > { %s245_s8 = scalar_lea.hbm %s1117_s2, %s584_s25  ;;  %s1050_s9 = sshll.u32 %s232_s21, 4  ;;  %s250_s9 = int_to_ptr.vmem [resolvable:$true] %s1050_s9 }
  0x68   : > { %s247_s10 = sshll.u32 %s245_s8, 4  ;;  %s568_s27 = sshll.u32 %s1136_s28, 7  ;;  %s1053_s10 = int_to_ptr.hbm [resolvable:$true] %s247_s10 }
  0x69   : > { %s730_s29 = sshra.s32 %s1053_s10, 4  ;;  %s732_s30 = sshrl.u32 %s568_s27, 4  ;;  %s731_s29 = int_to_ptr.hbm [resolvable:$true] %s730_s29 }
  0x6a   : > { %s737_s7 = scalar_lea.hbm %s731_s29, %s732_s30  ;;  %s741_s12 = scalar_lea.hbm %s1117_s2, 24 }
  0x6b   : > { %p738_p10 = scmp.ne.s32.totalorder %s731_s29, %s737_s7  ;;  %p743_p13 = scmp.lt.s32.totalorder %s741_s12, %s737_s7 }
  0x6d   : > { %p739_p11 = pnand %p738_p10, %p1042_p3 }
  0x6f   : > { %p740_p12 = pneg %p739_p11 }
  0x71   : > { %p745_p0 = pnand %p743_p13, %p740_p12 }
  0x73   : > { %748 = shalt.err (!%p745_p0)
}
  0x74   : > { %s749_s4 = sshra.s32 %s250_s9, 4  ;;  %s863_s25 = smov [#allocation8]   ;;  %s750_s4 = int_to_ptr.vmem [resolvable:$true] %s749_s4 }
  0x75   : > { %s756_s21 = scalar_lea.vmem %s750_s4, %s732_s30  ;;  %s760_s26 = scalar_lea.vmem %s863_s25, 32 }
  0x76   : > { %p757_p1 = scmp.ne.s32.totalorder %s750_s4, %s756_s21  ;;  %p762_p5 = scmp.lt.s32.totalorder %s760_s26, %s756_s21 }
  0x78   : > { %p758_p2 = pnand %p757_p1, %p1042_p3 }
  0x7a   : > { %p759_p4 = pneg %p758_p2 }
  0x7c   : > { %p764_p6 = pnand %p762_p5, %p759_p4 }
  0x7e   : > { %767 = shalt.err (!%p764_p6)
}
  0x7f   : > { %s864_s22 = smov 128   ;;  %s865_s8 = smov 8  }
  0x80   : > { %255 = dma.hbm_to_vmem [thread:$0]  (%p1042_p3), %s1053_s10, %s568_s27, %s250_s9, %s1039_s5, %s864_s22, %s864_s22, %s865_s8  }
  0x81 PF: > { %p569_p8 = scmp.ge.s32.totalorder %s855_s17, 1  ;;  %p257_p9 = scmp.lt.s32.totalorder %s855_s17, 3 }
  0x83   : > { %p258_p10 = pnand %p569_p8, %p257_p9 }
  0x84   : > { %s263_s29 = sand.u32 (!%p258_p10), 1, %s839_s13  }
  0x85   : > { %261 = sbr.rel (%p258_p10) target bundleno = 510 (0x1fe), region = 32  ;;  %s570_s30 = sshll.u32 (!%p258_p10), %s263_s29, 4 }
  0x86   : > { %s264_s7 = scalar_lea.sflag (!%p258_p10), [#allocation4], %s263_s29  ;;  %s267_s6 = scalar_lea.vmem (!%p258_p10), [#allocation3], %s570_s30 }
  0x8a   : > { %822 = dma.done.wait (%p934_p7), %s264_s7, 256  }
  0x8b   : > { %824 = vsyncadd (%p934_p7), %s264_s7, 4294967040  ;;  %s273_s28 = sand.u32 1, %s917_s18   ;;  %s277_s11 = scalar_lea.vmem [#allocation6], %s570_s30 }
  0x8c   : > { %s274_s5 = scalar_lea.sflag [#allocation7], %s273_s28 }
  0x8d   : > { %826 = dma.done.wait (%p934_p7), %s274_s5, 512  }
  0x8e   : > { %828 = vsyncadd (%p934_p7), %s274_s5, 4294966784  ;;  %s287_s9 = scalar_lea.vmem [#allocation8], %s570_s30  ;;  %p573_p3 = scmp.ne.s32.totalorder %s847_s15, 0 }
  0x90   : > { %340 = sbr.rel (%p573_p3) target bundleno = 152 (0x98), region = 48 }
  0x95   : > { %vm341_vm0 = vcmask 7168   ;;  %v866_v0 = vmov 0.0  }
  0x96   : > { %342 = vst.msk [vmem:[#allocation2] sm:$0xff] %vm341_vm0, %v866_v0 }
  0x97   : > { %343 = vst.msk [vmem:[#allocation2 + $0x8] sm:$0xff] %vm341_vm0, %v866_v0 }
  0x98 PF: > { %v344_v1 = vld [vmem:[%s267_s6] sm:$0xff]  ;;  %v345_v6 = vld [vmem:[%s267_s6 + $0x8] sm:$0xff]  ;;  %p574_p7 = scmp.ge.s32.totalorder %s847_s15, 1 }
  0x99   : > { %v346_v2 = vld [vmem:[%s277_s11] sm:$0xff]  ;;  %v347_v7 = vld [vmem:[%s277_s11 + $0x8] sm:$0xff] }
  0x9a   : > { %v348_v3 = vld [vmem:[%s287_s9] sm:$0xff]  ;;  %v350_v4 = vsub.f32 %v344_v1, %v346_v2  ;;  %v349_v8 = vld [vmem:[%s287_s9 + $0x8] sm:$0xff]  ;;  %v351_v11 = vsub.f32 %v345_v6, %v347_v7 }
  0x9b   : > { %v352_v5 = vsub.f32 %v344_v1, %v348_v3  ;;  %v353_v12 = vsub.f32 %v345_v6, %v349_v8 }
  0x9c   : > { %v354_v9 = vmul.f32 %v350_v4, %v350_v4  ;;  %v355_v14 = vmul.f32 %v351_v11, %v351_v11 }
  0x9d   : > { %v356_v10 = vmul.f32 %v352_v5, %v352_v5  ;;  %v357_v15 = vmul.f32 %v353_v12, %v353_v12 }
  0x9f   : > { %v358_v13 = vsub.f32 %v354_v9, %v356_v10  ;;  %v359_v16 = vsub.f32 %v355_v14, %v357_v15 }
  0xa1   : > { %360 = vadd.xlane.f32.xlu0 %v358_v13 }
  0xa9   : > { %362 = vadd.xlane.f32.xlu0 %v359_v16 }
 0x114   : > { %v361_v17 = vpop.xlane.xlu0 %360 }
 0x115   : > { %v364_v18 = vadd.f32 0.5, %v361_v17 }
 0x117   : > { %v366_v19 = vmax.f32 %v364_v18, 0.0 }
 0x11b   : > { %373 = sbr.rel (%p574_p7) target bundleno = 293 (0x125), region = 52 }
 0x11c   : > { %v363_v20 = vpop.xlane.xlu0 %362 }
 0x11d   : > { %v365_v21 = vadd.f32 0.5, %v363_v20 }
 0x11f   : > { %v367_v22 = vmax.f32 %v365_v21, 0.0 }
 0x120   : > { %v374_v23 = vld [vmem:[#allocation2] sm:$0xff]  ;;  %vm378_vm1 = vcmask 7168   ;;  %v375_v24 = vld [vmem:[#allocation2 + $0x8] sm:$0xff] }
 0x121   : > { %v376_v25 = vadd.f32 %v374_v23, %v366_v19  ;;  %v377_v26 = vadd.f32 %v375_v24, %v367_v22 }
 0x123   : > { %379 = vst.msk [vmem:[#allocation2] sm:$0xff] %vm378_vm1, %v376_v25 }
 0x124   : > { %380 = vst.msk [vmem:[#allocation2 + $0x8] sm:$0xff] %vm378_vm1, %v377_v26 }
 0x125 PF: > { %p575_p11 = scmp.lt.s32.totalorder %s847_s15, 1 }
 0x126   : > { %s576_s23 = sshll.u32 (!%p575_p11), %s847_s15, 4 }
 0x127   : > { %384 = sbr.rel (%p575_p11) target bundleno = 313 (0x139), region = 56 }
 0x12c   : > { %v386_v27 = vlaneseq  ;;  %v389_v28 = vstv %s576_s23  ;;  %v392_v32 = vld [vmem:[#allocation2] sm:$0xff]  ;;  %vm400_vm3 = vcmask 7168   ;;  %v393_v35 = vld [vmem:[#allocation2 + $0x8] sm:$0xff] }
 0x12e   : > { %v387_v29 = vshrl.u32 %v386_v27, 7 }
 0x130   : > { %v390_v30 = vadd.s32 %v389_v28, %v387_v29  ;;  %v388_v31 = vadd.s32 8, %v387_v29 }
 0x132   : > { %vm394_vm2 = vcmp.lt.s32.totalorder %v390_v30, 20  ;;  %v391_v33 = vadd.s32 %v389_v28, %v388_v31 }
 0x133   : > { %v396_v34 = vsel %vm394_vm2, %v366_v19, 0.0 }
 0x134   : > { %v398_v36 = vadd.f32 %v396_v34, %v392_v32  ;;  %vm395_vm4 = vcmp.lt.s32.totalorder %v391_v33, 20 }
 0x135   : > { %v397_v37 = vsel %vm395_vm4, %v367_v22, 0.0 }
 0x136   : > { %401 = vst.msk [vmem:[#allocation2] sm:$0xff] %vm400_vm3, %v398_v36  ;;  %v399_v38 = vadd.f32 %v397_v37, %v393_v35 }
 0x138   : > { %402 = vst.msk [vmem:[#allocation2 + $0x8] sm:$0xff] %vm400_vm3, %v399_v38 }
 0x139 PF: > { %p577_p12 = scmp.ne.s32.totalorder %s847_s15, 1 }
 0x13b   : > { %406 = sbr.rel (%p577_p12) target bundleno = 504 (0x1f8), region = 60 }
 0x140   : > { %v407_v39 = vld [vmem:[#allocation2] sm:$0xff]  ;;  %v408_v40 = vld [vmem:[#allocation2 + $0x8] sm:$0xff]  ;;  %vm409_vm5 = vcmask 7168  }
 0x141   : > { %v410_v41 = vsel %vm409_vm5, %v407_v39, 0.0  ;;  %v411_v42 = vsel %vm409_vm5, %v408_v40, 0.0 }
 0x142   : > { %v412_v43 = vadd.f32 %v411_v42, %v410_v41 }
 0x144   : > { %413 = vadd.xlane.f32.xlu0 %v412_v43 }
 0x1b7   : > { %v414_v44 = vpop.xlane.xlu0 %413 }
 0x1b8   : > { %v415_v45 = vrot.slane %v414_v44, 4 }
 0x1ba   : > { %v416_v46 = vadd.f32 %v415_v45, %v414_v44 }
 0x1bc   : > { %v417_v47 = vrot.slane %v416_v46, 2 }
 0x1be   : > { %v418_v48 = vadd.f32 %v417_v47, %v416_v46 }
 0x1c0   : > { %v419_v49 = vrot.slane %v418_v48, 1 }
 0x1c2   : > { %v420_v50 = vadd.f32 %v419_v49, %v418_v48 }
 0x1c4   : > { %585 = vpush %v420_v50 }
 0x1f5   : > { %s586_s10 = spop %585 }
 0x1f6   : > { %v422_v51 = vstv %s586_s10 }
 0x1f7   : > { %423 = vst [vmem:[#allocation9] sm:$0xff] %v422_v51 }
 0x1f8 PF: > { %p594_p13 = scmp.eq.s32.totalorder %s917_s18, 1  ;;  %s434_s20 = sshll.u32 %s1118_s3, 4  ;;  %s435_s20 = int_to_ptr.hbm [resolvable:$true] %s434_s20 }
 0x1f9   : > { %s867_s12 = smov [#allocation9]  }
 0x1fa   : > { %s432_s4 = sshll.u32 %s867_s12, 4  ;;  %s433_s4 = int_to_ptr.vmem [resolvable:$true] %s432_s4 }
 0x1fb   : > { %591 = dma.vmem_to_hbm [thread:$0]  (%p594_p13), %s433_s4, 128, %s435_s20, [#allocation5]  }
 0x1fc   : > { %830 = dma.done.wait (%p594_p13), [#allocation5], 128  }
 0x1fd   : > { %832 = vsyncadd (%p594_p13), [#allocation5], 4294967168 }
 0x1fe PF: > { %s20_s17 = sadd.s32 1, %s855_s17   ;;  %s1124_s12 = smov %s839_s13 }
 0x1ff   : > { %p17_p0 = scmp.ge.s32.totalorder %s20_s17, 4   ;;  %s1125_s13 = smov %s843_s14 }
 0x200   : > { %s1126_s14 = smov %s939_s24  ;;  %s1127_s15 = smov %s851_s16 }
 0x201   : > { %s1128_s16 = smov %s1130_s19  ;;  %19 = sbr.rel (!%p17_p0) target bundleno = 7 (0x7), region = 110 }
 0x206   :  { %448 = vsyncpa [#allocation4], 1 }
 0x207   :  { %450 = vsyncpa [#allocation4 + $0x1], 1 }
 0x208   :  { %451 = vsyncpa [#allocation7], 1 }
 0x209   :  { %453 = vsyncpa [#allocation7 + $0x1], 1 }
 0x20a   :  { %454 = vsyncpa [#allocation5], 1 }
 0x20b   :  { %456 = vsyncpa [#allocation5 + $0x1], 1 }

</bundles_post_ra>
